<compile_context>
chip_gen: v5e
topology: v5e:2x2
jax: 0.10.0
libtpu: 0.0.40
codegen_flags: <defaults>
</compile_context>

<pallas_src>
import functools

import jax
import jax.numpy as jnp
from jax.experimental import pallas as pl
from jax.experimental.pallas import tpu as pltpu


LANE = 128                      # pad matmul OUTPUT dims to this (lane-dense vst)
OUT_ROWS = 8                    # sublane granularity of the per-image logits block
VMEM_LIMIT = 32 * 1024 * 1024   # far above actual use (<2 MiB); fits v5e/v6e/v7x


def _round_up(x, m):
    return (x + m - 1) // m * m


# ----------------------------------------------------------------------------
# Fused Pallas kernel: conv3x3(pad=1)+ReLU  ->  flatten  ->  Linear
# ----------------------------------------------------------------------------
def _fused_cnn_kernel(p_ref, wc_ref, bc_ref, wr_ref, bfc_ref, o_ref, *,
                      conv_out, ncls_pad):
    """One grid step == one image.

    p_ref   : (H*W, C_in*9)            bf16  im2col patches of this image (streamed)
    wc_ref  : (C_in*9, COUT_PAD)       bf16  conv weight (VMEM-resident)
    bc_ref  : (1, COUT_PAD)            f32   conv bias   (VMEM-resident)
    wr_ref  : (H*W, conv_out*NCLS_PAD) bf16  repacked FC weight (VMEM-resident)
              wr[p, c*NCLS_PAD + cls] = fc_w[cls, c*H*W + p]
    bfc_ref : (1, NCLS_PAD)            f32   FC bias     (VMEM-resident)
    o_ref   : (OUT_ROWS, NCLS_PAD)     f32   this image's logits (row 0 is real)
    """
    # features: conv as im2col matmul (bf16 in, f32 accumulate) + bias + ReLU.
    feat = jnp.dot(p_ref[...], wc_ref[...], preferred_element_type=jnp.float32)
    feat = jnp.maximum(feat + bc_ref[...], 0.0)            # (H*W, COUT_PAD) f32

    # classifier: logits[cls] = fc_b[cls] + sum_{p,c} feat[p,c]*wr[p, c*NCLS_PAD+cls]
    # One MXU matmul contracting over positions, then sum the diagonal blocks
    # over the (tiny, static) channel axis.  Feature map never leaves VMEM.
    feat_t = jnp.transpose(feat)[:conv_out, :].astype(jnp.bfloat16)  # (cout, H*W)
    m = jnp.dot(feat_t, wr_ref[...],
                preferred_element_type=jnp.float32)        # (cout, cout*NCLS_PAD)
    logits = bfc_ref[...]                                  # (1, NCLS_PAD)
    for c in range(conv_out):                              # static unroll (8)
        logits = logits + m[c:c + 1, c * ncls_pad:(c + 1) * ncls_pad]
    o_ref[...] = jnp.broadcast_to(logits, o_ref.shape)     # lane-dense full-block store


def fused_cnn_forward(patches, conv_w, conv_b, fc_w, fc_b, *,
                      n_images, hw, conv_out):
    """patches: (N*H*W, C_in*9) bf16; weights/biases as packed by pack_params."""
    rows, kdim = patches.shape
    assert rows == n_images * hw and hw % 8 == 0
    cout_pad = conv_w.shape[1]
    ncls_pad = fc_b.shape[1]
    assert fc_w.shape == (hw, conv_out * ncls_pad)

    kernel = functools.partial(_fused_cnn_kernel, conv_out=conv_out,
                               ncls_pad=ncls_pad)
    return pl.pallas_call(
        kernel,
        out_shape=jax.ShapeDtypeStruct((n_images * OUT_ROWS, ncls_pad), jnp.float32),
        grid=(n_images,),
        in_specs=[
            pl.BlockSpec((hw, kdim), lambda i: (i, 0)),                # streamed patches
            pl.BlockSpec((kdim, cout_pad), lambda i: (0, 0)),          # resident conv W
            pl.BlockSpec((1, cout_pad), lambda i: (0, 0)),             # resident conv b
            pl.BlockSpec((hw, conv_out * ncls_pad), lambda i: (0, 0)),  # resident FC W
            pl.BlockSpec((1, ncls_pad), lambda i: (0, 0)),             # resident FC b
        ],
        out_specs=pl.BlockSpec((OUT_ROWS, ncls_pad), lambda i: (i, 0)),
        compiler_params=pltpu.CompilerParams(
            dimension_semantics=("parallel",),   # images independent -> v7x 2 TCs
            vmem_limit_bytes=VMEM_LIMIT),
    )(patches, conv_w, conv_b, fc_w, fc_b)


# ----------------------------------------------------------------------------
# Parameters: PyTorch-layout init + one-time TPU repack
# ----------------------------------------------------------------------------
def init_params(key, input_channels, conv_out, num_classes, H, W):
    k1, k2, k3, k4 = jax.random.split(key, 4)
    conv_w = jax.random.normal(k1, (conv_out, input_channels, 3, 3),
                               jnp.float32) * 0.1            # (C_out, C_in, 3, 3)
    conv_b = jax.random.normal(k2, (conv_out,), jnp.float32) * 0.1
    fc_w = jax.random.normal(k3, (num_classes, conv_out * H * W),
                             jnp.float32) * 0.02              # (Ncls, C*H*W)
    fc_b = jax.random.normal(k4, (num_classes,), jnp.float32) * 0.02
    return dict(conv_w=conv_w, conv_b=conv_b, fc_w=fc_w, fc_b=fc_b)


def pack_params(params, H, W):
    """One-time repack into TPU-friendly layouts (no per-forward transposes).

    - conv weight -> (C_in*9, COUT_PAD) bf16, rows in (c_in, kh, kw) im2col order.
      K (=36) is NOT padded (kernel reads the full dim); only the output lane
      dim is padded to 128 with zeros.
    - fc weight   -> (H*W, conv_out*NCLS_PAD) bf16 with
      Wr[p, c*NCLS_PAD + cls] = fc_w[cls, c*H*W + p]: PyTorch's (C,H,W) flatten
      order is folded into the row/column layout; class padding is zero so
      padded logit columns are exactly fc_b_pad = 0 and slicing recovers the
      PyTorch result.
    - biases      -> (1, padded) f32 rows.
    """
    conv_w, conv_b = params["conv_w"], params["conv_b"]
    fc_w, fc_b = params["fc_w"], params["fc_b"]
    cout, cin, kh, kw = conv_w.shape
    ncls, feat_dim = fc_w.shape
    hw = H * W
    assert feat_dim == cout * hw

    kdim = cin * kh * kw
    cout_pad = _round_up(cout, LANE)
    ncls_pad = _round_up(ncls, LANE)

    w1 = conv_w.reshape(cout, kdim).T                           # (kdim, cout)
    w1 = jnp.pad(w1, ((0, 0), (0, cout_pad - cout)))
    b1 = jnp.pad(conv_b, (0, cout_pad - cout)).reshape(1, cout_pad)

    w2 = fc_w.reshape(ncls, cout, hw)                           # [cls, c, p]
    w2 = jnp.transpose(w2, (2, 1, 0))                           # [p, c, cls]
    w2 = jnp.pad(w2, ((0, 0), (0, 0), (0, ncls_pad - ncls)))    # pad classes
    w2 = w2.reshape(hw, cout * ncls_pad)
    b2 = jnp.pad(fc_b, (0, ncls_pad - ncls)).reshape(1, ncls_pad)

    return dict(conv_w=w1.astype(jnp.bfloat16),
                conv_b=b1.astype(jnp.float32),
                fc_w=w2.astype(jnp.bfloat16),
                fc_b=b2.astype(jnp.float32))


# ----------------------------------------------------------------------------
# Forward
# ----------------------------------------------------------------------------
def _im2col_3x3_pad1(x_nchw):
    """NCHW -> (N*H*W, C_in*9) bf16 patches; columns ordered (c, kh, kw)."""
    N, C, H, W = x_nchw.shape
    x_nhwc = jnp.transpose(x_nchw, (0, 2, 3, 1)).astype(jnp.bfloat16)
    xp = jnp.pad(x_nhwc, ((0, 0), (1, 1), (1, 1), (0, 0)))
    cols = jnp.stack(
        [xp[:, di:di + H, dj:dj + W, :] for di in range(3) for dj in range(3)],
        axis=-1)                                               # (N, H, W, C, 9)
    return cols.reshape(N * H * W, C * 9)


@functools.partial(jax.jit, static_argnames=("conv_out", "num_classes"))
def forward(packed, x_nchw, *, conv_out, num_classes):
    """Equivalent of AbstractCNN.forward for the concrete instantiation above."""
    N, C, H, W = x_nchw.shape
    hw = H * W
    ncls_pad = packed["fc_b"].shape[1]

    # TODO(synk): form the im2col patches inside the kernel (halo DMA / 9
    # shifted-slab matmuls) to drop the 9x XLA-side activation expansion.
    patches = _im2col_3x3_pad1(x_nchw)                         # (N*hw, C*9) bf16

    out = fused_cnn_forward(patches, packed["conv_w"], packed["conv_b"],
                            packed["fc_w"], packed["fc_b"],
                            n_images=N, hw=hw, conv_out=conv_out)
    return out.reshape(N, OUT_ROWS, ncls_pad)[:, 0, :num_classes]


def reference_forward(params, x_nchw):
    """Pure-JAX f32 reference (PyTorch semantics) for a tolerance check."""
    y = jax.lax.conv_general_dilated(
        x_nchw, params["conv_w"], window_strides=(1, 1), padding="SAME",
        dimension_numbers=("NCHW", "OIHW", "NCHW"))
    y = jnp.maximum(y + params["conv_b"][None, :, None, None], 0.0)
    flat = y.reshape(y.shape[0], -1)                 # PyTorch (C,H,W) flatten
    return flat @ params["fc_w"].T + params["fc_b"]


# ----------------------------------------------------------------------------
# Main
# ----------------------------------------------------------------------------
if __name__ == "__main__":
    key = jax.random.PRNGKey(0)
    kx, kp = jax.random.split(key)

    batch, input_channels, H, W = 2, 4, 16, 16
    conv_out, num_classes = 8, 10

    x = jax.random.normal(kx, (batch, input_channels, H, W), jnp.float32)
    params = init_params(kp, input_channels, conv_out, num_classes, H, W)
    packed = pack_params(params, H, W)     # one-time repack, outside the jit

    out = forward(packed, x, conv_out=conv_out, num_classes=num_classes)
    out = jax.block_until_ready(out)
    assert out.shape == (batch, num_classes), out.shape
    assert out.dtype == jnp.float32

    ref = reference_forward(params, x)
    max_err = float(jnp.max(jnp.abs(out - ref)))
    assert bool(jnp.allclose(out, ref, atol=1e-1, rtol=1e-1)), ("max abs err", max_err)

    print("KERNEL_OK")
</pallas_src>

<mosaic_0001>
module attributes {stable_mosaic.version = 11 : i64} {
  func.func @_fused_cnn_kernel(%arg0: i32, %arg1: memref<256x36xbf16, #tpu.memory_space<vmem>>, %arg2: memref<36x128xbf16, #tpu.memory_space<vmem>>, %arg3: memref<1x128xf32, #tpu.memory_space<vmem>>, %arg4: memref<256x1024xbf16, #tpu.memory_space<vmem>>, %arg5: memref<1x128xf32, #tpu.memory_space<vmem>>, %arg6: memref<8x128xf32, #tpu.memory_space<vmem>>) attributes {dimension_semantics = [#tpu.dimension_semantics<parallel>], iteration_bounds = array<i64: 2>, scalar_prefetch = 0 : i64, scratch_operands = 0 : i64, tpu.core_type = #tpu.core_type<tc>, window_params = [{transform_indices = @transform_0, window_bounds = array<i64: 256, 36>}, {pipeline_mode = #tpu.pipeline_mode<synchronous>, transform_indices = @transform_1, window_bounds = array<i64: 36, 128>}, {pipeline_mode = #tpu.pipeline_mode<synchronous>, transform_indices = @transform_2, window_bounds = array<i64: 1, 128>}, {pipeline_mode = #tpu.pipeline_mode<synchronous>, transform_indices = @transform_3, window_bounds = array<i64: 256, 1024>}, {pipeline_mode = #tpu.pipeline_mode<synchronous>, transform_indices = @transform_4, window_bounds = array<i64: 1, 128>}, {transform_indices = @transform_5, window_bounds = array<i64: 8, 128>}]} {
    %c0 = arith.constant 0 : index
    %c0_0 = arith.constant 0 : index
    %0 = vector.load %arg1[%c0, %c0_0] : memref<256x36xbf16, #tpu.memory_space<vmem>>, vector<256x36xbf16>
    %c0_1 = arith.constant 0 : index
    %c0_2 = arith.constant 0 : index
    %1 = vector.load %arg2[%c0_1, %c0_2] : memref<36x128xbf16, #tpu.memory_space<vmem>>, vector<36x128xbf16>
    %cst = arith.constant dense<0.000000e+00> : vector<256x128xf32>
    %2 = tpu.matmul %0, %1, %cst {dimension_numbers = #tpu.dot_dimension_numbers<[1], [0], [0], [1], [0, 0, 1, 1], [], []>} : vector<256x36xbf16>, vector<36x128xbf16>, vector<256x128xf32> -> vector<256x128xf32>
    %c0_3 = arith.constant 0 : index
    %c0_4 = arith.constant 0 : index
    %3 = vector.load %arg3[%c0_3, %c0_4] : memref<1x128xf32, #tpu.memory_space<vmem>>, vector<1x128xf32>
    %4 = vector.broadcast %3 : vector<1x128xf32> to vector<256x128xf32>
    %5 = arith.addf %2, %4 : vector<256x128xf32>
    %cst_5 = arith.constant 0.000000e+00 : f32
    %6 = vector.broadcast %cst_5 : f32 to vector<256x128xf32>
    %7 = arith.maximumf %5, %6 : vector<256x128xf32>
    %8 = tpu.transpose %7, [1, 0] : vector<256x128xf32> -> vector<128x256xf32>
    %9 = vector.extract_strided_slice %8 {offsets = [0, 0], sizes = [8, 256], strides = [1, 1]} : vector<128x256xf32> to vector<8x256xf32>
    %10 = arith.truncf %9 : vector<8x256xf32> to vector<8x256xbf16>
    %c0_6 = arith.constant 0 : index
    %c0_7 = arith.constant 0 : index
    %11 = vector.load %arg4[%c0_6, %c0_7] : memref<256x1024xbf16, #tpu.memory_space<vmem>>, vector<256x1024xbf16>
    %cst_8 = arith.constant dense<0.000000e+00> : vector<8x1024xf32>
    %12 = tpu.matmul %10, %11, %cst_8 {dimension_numbers = #tpu.dot_dimension_numbers<[1], [0], [0], [1], [0, 0, 1, 1], [], []>} : vector<8x256xbf16>, vector<256x1024xbf16>, vector<8x1024xf32> -> vector<8x1024xf32>
    %c0_9 = arith.constant 0 : index
    %c0_10 = arith.constant 0 : index
    %13 = vector.load %arg5[%c0_9, %c0_10] : memref<1x128xf32, #tpu.memory_space<vmem>>, vector<1x128xf32>
    %14 = vector.extract_strided_slice %12 {offsets = [0, 0], sizes = [1, 128], strides = [1, 1]} : vector<8x1024xf32> to vector<1x128xf32>
    %15 = arith.addf %13, %14 : vector<1x128xf32>
    %16 = vector.extract_strided_slice %12 {offsets = [1, 128], sizes = [1, 128], strides = [1, 1]} : vector<8x1024xf32> to vector<1x128xf32>
    %17 = arith.addf %15, %16 : vector<1x128xf32>
    %18 = vector.extract_strided_slice %12 {offsets = [2, 256], sizes = [1, 128], strides = [1, 1]} : vector<8x1024xf32> to vector<1x128xf32>
    %19 = arith.addf %17, %18 : vector<1x128xf32>
    %20 = vector.extract_strided_slice %12 {offsets = [3, 384], sizes = [1, 128], strides = [1, 1]} : vector<8x1024xf32> to vector<1x128xf32>
    %21 = arith.addf %19, %20 : vector<1x128xf32>
    %22 = vector.extract_strided_slice %12 {offsets = [4, 512], sizes = [1, 128], strides = [1, 1]} : vector<8x1024xf32> to vector<1x128xf32>
    %23 = arith.addf %21, %22 : vector<1x128xf32>
    %24 = vector.extract_strided_slice %12 {offsets = [5, 640], sizes = [1, 128], strides = [1, 1]} : vector<8x1024xf32> to vector<1x128xf32>
    %25 = arith.addf %23, %24 : vector<1x128xf32>
    %26 = vector.extract_strided_slice %12 {offsets = [6, 768], sizes = [1, 128], strides = [1, 1]} : vector<8x1024xf32> to vector<1x128xf32>
    %27 = arith.addf %25, %26 : vector<1x128xf32>
    %28 = vector.extract_strided_slice %12 {offsets = [7, 896], sizes = [1, 128], strides = [1, 1]} : vector<8x1024xf32> to vector<1x128xf32>
    %29 = arith.addf %27, %28 : vector<1x128xf32>
    %30 = vector.shape_cast %29 : vector<1x128xf32> to vector<1x128xf32>
    %31 = vector.broadcast %30 : vector<1x128xf32> to vector<8x128xf32>
    %c0_11 = arith.constant 0 : index
    %c0_12 = arith.constant 0 : index
    %32 = vector.load %arg6[%c0_11, %c0_12] : memref<8x128xf32, #tpu.memory_space<vmem>>, vector<8x128xf32>
    tpu.vector_store %arg6[%c0_11, %c0_12], %31 {strides = array<i32>} : memref<8x128xf32, #tpu.memory_space<vmem>>, vector<8x128xf32>,
    return
  }
  func.func @transform_0(%arg0: i32) -> (i32, i32) {
    %c0_i32 = arith.constant 0 : i32
    %c0_i32_0 = arith.constant 0 : i32
    return %arg0, %c0_i32 : i32, i32
  }
  func.func @transform_1(%arg0: i32) -> (i32, i32) {
    %c0_i32 = arith.constant 0 : i32
    %c0_i32_0 = arith.constant 0 : i32
    %c0_i32_1 = arith.constant 0 : i32
    return %c0_i32, %c0_i32_0 : i32, i32
  }
  func.func @transform_2(%arg0: i32) -> (i32, i32) {
    %c0_i32 = arith.constant 0 : i32
    %c0_i32_0 = arith.constant 0 : i32
    %c0_i32_1 = arith.constant 0 : i32
    return %c0_i32, %c0_i32_0 : i32, i32
  }
  func.func @transform_3(%arg0: i32) -> (i32, i32) {
    %c0_i32 = arith.constant 0 : i32
    %c0_i32_0 = arith.constant 0 : i32
    %c0_i32_1 = arith.constant 0 : i32
    return %c0_i32, %c0_i32_0 : i32, i32
  }
  func.func @transform_4(%arg0: i32) -> (i32, i32) {
    %c0_i32 = arith.constant 0 : i32
    %c0_i32_0 = arith.constant 0 : i32
    %c0_i32_1 = arith.constant 0 : i32
    return %c0_i32, %c0_i32_0 : i32, i32
  }
  func.func @transform_5(%arg0: i32) -> (i32, i32) {
    %c0_i32 = arith.constant 0 : i32
    %c0_i32_0 = arith.constant 0 : i32
    return %arg0, %c0_i32 : i32, i32
  }
}

</mosaic_0001>

<bundles_post_ra>
// kernel: forward.1
= control target key start
LH: loop header
LB: loop body
LE: loop exit
PB: predicated region body
PF: predicated region fallthrough
CT: control target
= control target key end

     0   :  { %s2525_s18 = smov 0   ;;  %s3442_s0 = inlined_call_operand.vmem [shape: bf16[512,36], index: 0, kind: input, shape index: {}]   ;;  %s3443_s1 = inlined_call_operand.vmem [shape: bf16[36,128], index: 1, kind: input, shape index: {}]   ;;  %s3444_s2 = inlined_call_operand.vmem [shape: f32[1,128], index: 2, kind: input, shape index: {}]   ;;  %s3445_s3 = inlined_call_operand.vmem [shape: bf16[256,1024], index: 3, kind: input, shape index: {}]   ;;  %s3446_s4 = inlined_call_operand.vmem [shape: f32[1,128], index: 4, kind: input, shape index: {}]   ;;  %s3447_s5 = inlined_call_operand.vmem [shape: f32[16,128], index: 5, kind: output, shape index: {}]  }
   0x1 LB: > { %s2531_s19 = sadd.s32 4294967295, %s2493_s18   ;;  %p1683_p0 = scmp.ge.s32.totalorder %s2493_s18, 1  ;;  %s2493_s18 = sphi %s2525_s18, %s15_s18  }
   0x2   : > { %p188_p1 = scmp.lt.s32.totalorder %s2493_s18, 3 }
   0x4   : > { %p189_p2 = pnand %p1683_p0, %p188_p1 }
   0x5   : > { %s1684_s22 = sshll.u32 (!%p189_p2), %s2531_s19, 5  ;;  %p221_p4 = scmp.lt.s32.totalorder (!%p189_p2), %s2531_s19, 1 }
   0x6   : > { %192 = sbr.rel (%p189_p2) target bundleno = 726 (0x2d6), region = 40  ;;  %p216_p3 = scmp.lt.s32.totalorder (!%p189_p2), %s1684_s22, 63 }
   0xb   : > { %v262_v0 = vld [vmem:[%s3443_s1 + $0x10] sm:$0x3]  ;;  %vm411_vm0 = vcmask 1041408   ;;  %s3449_s22 = smov (!%p216_p3, %s1684_s22), 63  ;;  %v2306_v4 = vld [vmem:[%s3443_s1 + $0x8] sm:$0xff]  ;;  %v2305_v5 = vld [vmem:[%s3443_s1] sm:$0xff] }
   0xc   : > { %v356_v1 = vunpack.c.l.b16 %v262_v0  ;;  %s1685_s25 = sshll.u32 %s3449_s22, 2  ;;  %vm362_vm1 = vcmask 293888   ;;  %v2601_v38 = vld [vmem:[%s3444_s2] ss:$0 sm:$0xff]  ;;  %s3451_s19 = smov (!%p221_p4, %s2531_s19), 1 }
   0xd   : > { %s2548_s30 = scalar_lea.vmem %s3442_s0, %s1685_s25  ;;  %s1686_s16 = sshll.u32 %s3451_s19, 3 }
   0xe   : > { %v359_v2 = vpack.c.b16 %v356_v1, %v356_v1  ;;  %v2289_v6 = vld [vmem:[%s2548_s30] sm:$0xff]  ;;  %v2290_v7 = vld [vmem:[%s2548_s30 + $0x8] sm:$0xff]  ;;  %v2291_v9 = vld [vmem:[%s2548_s30 + $0x10] sm:$0xff]  ;;  %s224_s21 = scalar_lea.vmem %s3447_s5, %s1686_s16 }
   0xf   : > { %v2301_v8 = vld [vmem:[%s2548_s30 + $0x60] sm:$0xff]  ;;  %v2302_v10 = vld [vmem:[%s2548_s30 + $0x68] sm:$0xff]  ;;  %v2292_v11 = vld [vmem:[%s2548_s30 + $0x18] sm:$0xff] }
  0x10   : > { %v413_v3 = vsel %vm411_vm0, %v359_v2, 0  ;;  %v2303_v12 = vld [vmem:[%s2548_s30 + $0x70] sm:$0xff]  ;;  %v2293_v13 = vld [vmem:[%s2548_s30 + $0x20] sm:$0xff]  ;;  %v2304_v14 = vld [vmem:[%s2548_s30 + $0x78] sm:$0xff] }
  0x11   : > { %420 = vmatpush.bf16.msra.mxu0 %v413_v3  ;;  %2435 = vmatpush.bf16.msra.mxu2 %v413_v3  ;;  %v2294_v15 = vld [vmem:[%s2548_s30 + $0x28] sm:$0xff]  ;;  %v2295_v16 = vld [vmem:[%s2548_s30 + $0x30] sm:$0xff]  ;;  %v2296_v17 = vld [vmem:[%s2548_s30 + $0x38] sm:$0xff] }
  0x12   : > { %2436 = vmatpush.bf16.msra.mxu3 %v413_v3  ;;  %v2297_v18 = vld [vmem:[%s2548_s30 + $0x40] sm:$0xff]  ;;  %v2298_v21 = vld [vmem:[%s2548_s30 + $0x48] sm:$0xff]  ;;  %v2299_v24 = vld [vmem:[%s2548_s30 + $0x50] sm:$0xff] }
  0x13   : > { %v2300_v27 = vld [vmem:[%s2548_s30 + $0x58] sm:$0xff] }
  0x15   : > { %421 = vmatpush.bf16.msra.mxu0 %v2306_v4  ;;  %2437 = vmatpush.bf16.msra.mxu2 %v2306_v4 }
  0x16   : > { %2438 = vmatpush.bf16.msra.mxu3 %v2306_v4 }
  0x19   : > { %422 = vmatpush.bf16.msra.mxu0 %v2305_v5  ;;  %2439 = vmatpush.bf16.msra.mxu2 %v2305_v5 }
  0x1a   : > { %2440 = vmatpush.bf16.msra.mxu3 %v2305_v5 }
  0x1c   : > { %1759 = vmatmul.msk.bf16.vlgmr.msra.gmra.mxu0 %vm362_vm1, %v2289_v6  ;;  %1771 = vmatmul.msk.bf16.vlgmr.msra.gmra.mxu2 %vm362_vm1, %v2301_v8 }
  0x1d   : > { %1773 = vmatmul.msk.bf16.vlgmr.msra.gmra.mxu3 %vm362_vm1, %v2303_v12 }
  0x2c   : > { %1760 = vmatmul.msk.bf16.gmra.mxu0 %vm362_vm1, %v2290_v7  ;;  %1772 = vmatmul.msk.bf16.gmra.mxu2 %vm362_vm1, %v2302_v10 }
  0x2d   : > { %1774 = vmatmul.msk.bf16.gmra.mxu3 %vm362_vm1, %v2304_v14 }
  0x3c   : > { %1761 = vmatmul.msk.bf16.gmra.mxu0 %vm362_vm1, %v2291_v9 }
  0x4c   : > { %1762 = vmatmul.msk.bf16.gmra.mxu0 %vm362_vm1, %v2292_v11 }
  0x5c   : > { %1763 = vmatmul.msk.bf16.gmra.mxu0 %vm362_vm1, %v2293_v13 }
  0x6c   : > { %1764 = vmatmul.msk.bf16.gmra.mxu0 %vm362_vm1, %v2294_v15 }
  0x7c   : > { %1765 = vmatmul.msk.bf16.gmra.mxu0 %vm362_vm1, %v2295_v16 }
  0x8c   : > { %1766 = vmatmul.msk.bf16.gmra.mxu0 %vm362_vm1, %v2296_v17 }
  0x99   : > { %v424_v19 = vpop.f32.mrf.mxu0 }
  0x9a   : > { %v425_v39 = vadd.f32 %v2601_v38, %v424_v19 }
  0x9c   : > { %1767 = vmatmul.msk.bf16.gmra.mxu0 %vm362_vm1, %v2297_v18  ;;  %v504_v42 = vmax.f32 %v425_v39, 0.0 }
  0x9f   : > { %v484_v13 = vpop.f32.mrf.mxu2 }
  0xa1   : > { %v426_v20 = vpop.f32.mrf.mxu0 }
  0xa2   : > { %v427_v45 = vadd.f32 %v2601_v38, %v426_v20 }
  0xa4   : > { %v505_v48 = vmax.f32 %v427_v45, 0.0 }
  0xa9   : > { %v429_v22 = vpop.f32.mrf.mxu0 }
  0xaa   : > { %v430_v51 = vadd.f32 %v2601_v38, %v429_v22  ;;  %v486_v22 = vpop.f32.mrf.mxu2 }
  0xac   : > { %1768 = vmatmul.msk.bf16.gmra.mxu0 %vm362_vm1, %v2298_v21  ;;  %v506_v54 = vmax.f32 %v430_v51, 0.0 }
  0xb1   : > { %v431_v23 = vpop.f32.mrf.mxu0 }
  0xb2   : > { %v432_v57 = vadd.f32 %v2601_v38, %v431_v23 }
  0xb4   : > { %v507_v60 = vmax.f32 %v432_v57, 0.0 }
  0xb9   : > { %v434_v25 = vpop.f32.mrf.mxu0 }
  0xba   : > { %v435_v63 = vadd.f32 %v2601_v38, %v434_v25  ;;  %v485_v25 = vadd.f32 %v2601_v38, %v484_v13 }
  0xbc   : > { %1769 = vmatmul.msk.bf16.gmra.mxu0 %vm362_vm1, %v2299_v24  ;;  %v508_v2 = vmax.f32 %v435_v63, 0.0  ;;  %v2359_v63 = vld [vmem:[%s3445_s3 + $0x19c] sm:$0xf0] }
  0xc1   : > { %v436_v26 = vpop.f32.mrf.mxu0 }
  0xc2   : > { %v437_v5 = vadd.f32 %v2601_v38, %v436_v26 }
  0xc4   : > { %v509_v8 = vmax.f32 %v437_v5, 0.0  ;;  %v1937_v5 = vld [vmem:[%s3445_s3 + $0x140] sm:$0xf] }
  0xc9   : > { %v439_v28 = vpop.f32.mrf.mxu0 }
  0xca   : > { %v440_v11 = vadd.f32 %v2601_v38, %v439_v28  ;;  %v528_v28 = vmax.f32 %v485_v25, 0.0  ;;  %v2339_v25 = vld [vmem:[%s3445_s3 + $0x104] sm:$0xf] }
  0xcc   : > { %1770 = vmatmul.msk.bf16.gmra.mxu0 %vm362_vm1, %v2300_v27  ;;  %v510_v15 = vmax.f32 %v440_v11, 0.0  ;;  %v2415_v11 = vld [vmem:[%s3445_s3 + $0x35c] sm:$0xf0] }
  0xd1   : > { %v441_v29 = vpop.f32.mrf.mxu0 }
  0xd2   : > { %v442_v18 = vadd.f32 %v2601_v38, %v441_v29  ;;  %v487_v29 = vadd.f32 %v2601_v38, %v486_v22 }
  0xd4   : > { %v511_v21 = vmax.f32 %v442_v18, 0.0 }
  0xd9   : > { %v2582_v30 = vpop.f32.mrf.mxu0 }
  0xda   : > { %v445_v24 = vadd.f32 %v2601_v38, %v2582_v30 }
  0xdc   : > { %v512_v27 = vmax.f32 %v445_v24, 0.0  ;;  %v2407_v24 = vld [vmem:[%s3445_s3 + $0x31c] sm:$0xf0] }
  0xe1   : > { %v2584_v31 = vpop.f32.mrf.mxu0 }
  0xe2   : > { %v447_v39 = vadd.f32 %v2601_v38, %v2584_v31  ;;  %v2367_v31 = vld [vmem:[%s3445_s3 + $0x1dc] sm:$0xf0] }
  0xe9   : > { %v2586_v32 = vpop.f32.mrf.mxu0 }
  0xf1   : > { %v2588_v33 = vpop.f32.mrf.mxu0 }
  0xf2   : > { %v452_v57 = vadd.f32 %v2601_v38, %v2588_v33  ;;  %v2225_v33 = vld [vmem:[%s3445_s3 + $0x380] sm:$0xf] }
  0xf9   : > { %v2590_v34 = vpop.f32.mrf.mxu0 }
  0xfa   : > { %v455_v13 = vadd.f32 %v2601_v38, %v2590_v34  ;;  %v2343_v34 = vld [vmem:[%s3445_s3 + $0x11c] sm:$0xf0] }
 0x101   : > { %v2592_v35 = vpop.f32.mrf.mxu0 }
 0x109   : > { %v2594_v36 = vpop.f32.mrf.mxu0 }
 0x111   : > { %v2596_v37 = vpop.f32.mrf.mxu0 }
 0x119   : > { %v464_v40 = vpop.f32.mrf.mxu0 }
 0x11a   : > { %v465_v41 = vadd.f32 %v2601_v38, %v464_v40  ;;  %v489_v40 = vpop.f32.mrf.mxu2 }
 0x11b   : > { %v490_v30 = vadd.f32 %v2601_v38, %v489_v40 }
 0x11c   : > { %v520_v43 = vmax.f32 %v465_v41, 0.0  ;;  %v2465_v41 = vpack.i.bf16 %v528_v28, %v512_v27  ;;  %v1907_v27 = vld [vmem:[%s3445_s3 + $0x120] sm:$0xf0]  ;;  %v1873_v28 = vld [vmem:[%s3445_s3 + $0xc0] sm:$0xf] }
 0x11e   : > { %v2449_v44 = vpack.i.bf16 %v520_v43, %v504_v42  ;;  %v513_v42 = vmax.f32 %v447_v39, 0.0  ;;  %v529_v43 = vmax.f32 %v487_v29, 0.0  ;;  %v2335_v39 = vld [vmem:[%s3445_s3 + $0xdc] sm:$0xf0]  ;;  %v1910_v29 = vor.u32 %v2339_v25, %v1907_v27  ;;  %v1977_v25 = vld [vmem:[%s3445_s3 + $0x188] sm:$0xf] }
 0x11f   : > { %v1874_v40 = vor.u32 %v2335_v39, %v1873_v28  ;;  %v2233_v28 = vld [vmem:[%s3445_s3 + $0x388] sm:$0xf] }
 0x120   : > { %2450 = vxpose.xlu0.b32.start [1/16] (narrow) %v2449_v44, 8  ;;  %v450_v44 = vadd.f32 %v2601_v38, %v2586_v32  ;;  %v2467_v45 = vpack.i.bf16 %v529_v43, %v513_v42  ;;  %v2431_v32 = vld [vmem:[%s3445_s3 + $0x3dc] sm:$0xf0]  ;;  %v2331_v43 = vld [vmem:[%s3445_s3 + $0xc4] sm:$0xf] }
 0x121   : > { %v466_v46 = vpop.f32.mrf.mxu0  ;;  %v2399_v42 = vld [vmem:[%s3445_s3 + $0x2dc] sm:$0xf0]  ;;  %v2424_v39 = vld [vmem:[%s3445_s3 + $0x3a4] sm:$0xf0] }
 0x122   : > { %v467_v47 = vadd.f32 %v2601_v38, %v466_v46  ;;  %v491_v46 = vpop.f32.mrf.mxu2  ;;  %v514_v51 = vmax.f32 %v450_v44, 0.0 }
 0x124   : > { %v521_v49 = vmax.f32 %v467_v47, 0.0  ;;  %v2001_v47 = vld [vmem:[%s3445_s3 + $0x1c0] sm:$0xf] }
 0x126   : > { %v2451_v50 = vpack.i.bf16 %v521_v49, %v505_v48  ;;  %v2002_v48 = vor.u32 %v2367_v31, %v2001_v47  ;;  %v2257_v49 = vld [vmem:[%s3445_s3 + $0x3c0] sm:$0xf] }
 0x127   : > { %v2097_v31 = vld [vmem:[%s3445_s3 + $0x280] sm:$0xf] }
 0x128   : > { %2452 = vxpose.xlu0.b32.cont [2/16] (narrow) %v2451_v50, 8  ;;  %v2363_v50 = vld [vmem:[%s3445_s3 + $0x1c4] sm:$0xf]  ;;  %1370 = vmatpush.bf16.msra.mxu1 %v2002_v48  ;;  %v2391_v48 = vld [vmem:[%s3445_s3 + $0x29c] sm:$0xf0] }
 0x129   : > { %v469_v52 = vpop.f32.mrf.mxu0 }
 0x12a   : > { %v470_v53 = vadd.f32 %v2601_v38, %v469_v52  ;;  %v530_v52 = vmax.f32 %v490_v30, 0.0  ;;  %v1875_v30 = vld [vmem:[%s3445_s3 + $0xe0] sm:$0xf0] }
 0x12b   : > { %v1878_v47 = vor.u32 %v2331_v43, %v1875_v30  ;;  %v462_v43 = vadd.f32 %v2601_v38, %v2596_v37  ;;  %v2416_v37 = vld [vmem:[%s3445_s3 + $0x364] sm:$0xf0] }
 0x12c   : > { %v522_v55 = vmax.f32 %v470_v53, 0.0  ;;  %v2258_v53 = vor.u32 %v2431_v32, %v2257_v49  ;;  %v457_v49 = vadd.f32 %v2601_v38, %v2592_v35  ;;  %v1809_v35 = vld [vmem:[%s3445_s3 + $0x40] sm:$0xf] }
 0x12e   : > { %v2453_v56 = vpack.i.bf16 %v522_v55, %v506_v54  ;;  %v2003_v54 = vld [vmem:[%s3445_s3 + $0x1e0] sm:$0xf0]  ;;  %v492_v55 = vadd.f32 %v2601_v38, %v491_v46  ;;  %1383 = vmatpush.bf16.msrb.mxu2 %v2258_v53  ;;  %v2327_v46 = vld [vmem:[%s3445_s3 + $0x9c] sm:$0xf0] }
 0x130   : > { %2454 = vxpose.xlu0.b32.cont [3/16] (narrow) %v2453_v56, 8  ;;  %v2006_v56 = vor.u32 %v2363_v50, %v2003_v54  ;;  %v2098_v54 = vor.u32 %v2391_v48, %v2097_v31  ;;  %v2201_v31 = vld [vmem:[%s3445_s3 + $0x348] sm:$0xf] }
 0x131   : > { %v471_v58 = vpop.f32.mrf.mxu0 }
 0x132   : > { %v472_v59 = vadd.f32 %v2601_v38, %v471_v58  ;;  %v494_v58 = vpop.f32.mrf.mxu3  ;;  %1396 = vmatpush.bf16.msrb.mxu3 %v2006_v56 }
 0x134   : > { %v523_v61 = vmax.f32 %v472_v59, 0.0  ;;  %v2469_v59 = vpack.i.bf16 %v530_v52, %v514_v51  ;;  %v2323_v51 = vld [vmem:[%s3445_s3 + $0x84] sm:$0xf] }
 0x135   : > { %v1843_v52 = vld [vmem:[%s3445_s3 + $0xa0] sm:$0xf0] }
 0x136   : > { %v2455_v62 = vpack.i.bf16 %v523_v61, %v507_v60  ;;  %v531_v60 = vmax.f32 %v492_v55, 0.0  ;;  %v515_v61 = vmax.f32 %v452_v57, 0.0  ;;  %v2319_v55 = vld [vmem:[%s3445_s3 + $0x5c] sm:$0xf0]  ;;  %v1846_v57 = vor.u32 %v2323_v51, %v1843_v52 }
 0x137   : > { %v2202_v52 = vor.u32 %v2416_v37, %v2201_v31 }
 0x138   : > { %2456 = vxpose.xlu0.b32.cont [4/16] (narrow) %v2455_v62, 8  ;;  %v1969_v62 = vld [vmem:[%s3445_s3 + $0x180] sm:$0xf] }
 0x139   : > { %v474_v0 = vpop.f32.mrf.mxu0 }
 0x13a   : > { %v475_v1 = vadd.f32 %v2601_v38, %v474_v0  ;;  %v1970_v0 = vor.u32 %v2359_v63, %v1969_v62  ;;  %v2315_v62 = vld [vmem:[%s3445_s3 + $0x44] sm:$0xf] }
 0x13b   : > { %v1811_v63 = vld [vmem:[%s3445_s3 + $0x60] sm:$0xf0] }
 0x13c   : > { %v524_v3 = vmax.f32 %v475_v1, 0.0  ;;  %v2423_v1 = vld [vmem:[%s3445_s3 + $0x39c] sm:$0xf0]  ;;  %1371 = vmatpush.bf16.msra.mxu1 %v1970_v0  ;;  %v1810_v0 = vor.u32 %v2319_v55, %v1809_v35  ;;  %v2169_v35 = vld [vmem:[%s3445_s3 + $0x308] sm:$0xf] }
 0x13d   : > { %v2408_v55 = vld [vmem:[%s3445_s3 + $0x324] sm:$0xf0] }
 0x13e   : > { %v2457_v4 = vpack.i.bf16 %v524_v3, %v508_v2  ;;  %v2355_v2 = vld [vmem:[%s3445_s3 + $0x184] sm:$0xf]  ;;  %v2226_v3 = vor.u32 %v2423_v1, %v2225_v33  ;;  %v1777_v33 = vld [vmem:[%s3445_s3] sm:$0xf] }
 0x140   : > { %2458 = vxpose.xlu0.b32.cont [5/16] (narrow) %v2457_v4, 8  ;;  %v1971_v4 = vld [vmem:[%s3445_s3 + $0x1a0] sm:$0xf0]  ;;  %1384 = vmatpush.bf16.msrb.mxu2 %v2226_v3  ;;  %v2033_v3 = vld [vmem:[%s3445_s3 + $0x200] sm:$0xf] }
 0x141   : > { %v476_v6 = vpop.f32.mrf.mxu0 }
 0x142   : > { %v477_v7 = vadd.f32 %v2601_v38, %v476_v6  ;;  %v2351_v6 = vld [vmem:[%s3445_s3 + $0x15c] sm:$0xf0] }
 0x144   : > { %v525_v9 = vmax.f32 %v477_v7, 0.0  ;;  %v495_v7 = vadd.f32 %v2601_v38, %v494_v58  ;;  %v2065_v58 = vld [vmem:[%s3445_s3 + $0x240] sm:$0xf] }
 0x146   : > { %v2459_v10 = vpack.i.bf16 %v525_v9, %v509_v8  ;;  %v1974_v8 = vor.u32 %v2355_v2, %v1971_v4  ;;  %v1938_v9 = vor.u32 %v2351_v6, %v1937_v5  ;;  %v532_v18 = vmax.f32 %v495_v7, 0.0  ;;  %v2311_v2 = vld [vmem:[%s3445_s3 + $0x1c] sm:$0xf0]  ;;  %v2307_v6 = vld [vmem:[%s3445_s3 + $0x4] sm:$0xf] }
 0x147   : > { %v2375_v4 = vld [vmem:[%s3445_s3 + $0x21c] sm:$0xf0]  ;;  %v1814_v5 = vor.u32 %v2315_v62, %v1811_v63  ;;  %v2427_v7 = vld [vmem:[%s3445_s3 + $0x3c4] sm:$0xf]  ;;  %v1881_v62 = vld [vmem:[%s3445_s3 + $0xc8] sm:$0xf] }
 0x148   : > { %2460 = vxpose.xlu0.b32.cont [6/16] (narrow) %v2459_v10, 8  ;;  %v2193_v10 = vld [vmem:[%s3445_s3 + $0x340] sm:$0xf]  ;;  %1397 = vmatpush.bf16.msrb.mxu3 %v1974_v8  ;;  %v2259_v8 = vld [vmem:[%s3445_s3 + $0x3e0] sm:$0xf0] }
 0x149   : > { %v479_v12 = vpop.f32.mrf.mxu0  ;;  %1372 = vmatpush.bf16.msra.mxu1 %v1938_v9  ;;  %v460_v9 = vadd.f32 %v2601_v38, %v2594_v36  ;;  %v2265_v36 = vld [vmem:[%s3445_s3 + $0x3c8] sm:$0xf] }
 0x14a   : > { %v480_v14 = vadd.f32 %v2601_v38, %v479_v12  ;;  %v2347_v12 = vld [vmem:[%s3445_s3 + $0x144] sm:$0xf]  ;;  %v2336_v63 = vld [vmem:[%s3445_s3 + $0xe4] sm:$0xf0] }
 0x14c   : > { %v526_v16 = vmax.f32 %v480_v14, 0.0  ;;  %v2194_v14 = vor.u32 %v2415_v11, %v2193_v10 }
 0x14e   : > { %v2461_v17 = vpack.i.bf16 %v526_v16, %v510_v15  ;;  %v1939_v15 = vld [vmem:[%s3445_s3 + $0x160] sm:$0xf0]  ;;  %1385 = vmatpush.bf16.msrb.mxu2 %v2194_v14  ;;  %v2368_v14 = vld [vmem:[%s3445_s3 + $0x1e4] sm:$0xf0] }
 0x14f   : > { %v1942_v16 = vor.u32 %v2347_v12, %v1939_v15  ;;  %v1779_v12 = vld [vmem:[%s3445_s3 + $0x20] sm:$0xf0]  ;;  %v1778_v15 = vor.u32 %v2311_v2, %v1777_v33  ;;  %v2400_v33 = vld [vmem:[%s3445_s3 + $0x2e4] sm:$0xf0]  ;;  %v1882_v2 = vor.u32 %v2336_v63, %v1881_v62 }
 0x150   : > { %2462 = vxpose.xlu0.b32.cont [7/16] (narrow) %v2461_v17, 8  ;;  %v2471_v17 = vpack.i.bf16 %v531_v60, %v515_v61  ;;  %v517_v60 = vmax.f32 %v457_v49, 0.0  ;;  %v2403_v49 = vld [vmem:[%s3445_s3 + $0x304] sm:$0xf] }
 0x151   : > { %v481_v19 = vpop.f32.mrf.mxu0  ;;  %1398 = vmatpush.bf16.msrb.mxu3 %v1942_v16  ;;  %v2432_v16 = vld [vmem:[%s3445_s3 + $0x3e4] sm:$0xf0] }
 0x152   : > { %v482_v20 = vadd.f32 %v2601_v38, %v481_v19  ;;  %v496_v19 = vpop.f32.mrf.mxu3 }
 0x153   : > { %v497_v32 = vadd.f32 %v2601_v38, %v496_v19  ;;  %v1782_v19 = vor.u32 %v2307_v6, %v1779_v12  ;;  %v1849_v6 = vld [vmem:[%s3445_s3 + $0x88] sm:$0xf]  ;;  %v2379_v12 = vld [vmem:[%s3445_s3 + $0x244] sm:$0xf] }
 0x154   : > { %v527_v23 = vmax.f32 %v482_v20, 0.0  ;;  %v516_v20 = vmax.f32 %v455_v13, 0.0  ;;  %v2009_v13 = vld [vmem:[%s3445_s3 + $0x1c8] sm:$0xf] }
 0x155   : > { %1399 = vmatpush.bf16.msrb.mxu3 %v1910_v29  ;;  %v533_v61 = vmax.f32 %v497_v32, 0.0  ;;  %v2163_v32 = vld [vmem:[%s3445_s3 + $0x320] sm:$0xf0] }
 0x156   : > { %v2463_v26 = vpack.i.bf16 %v527_v23, %v511_v21  ;;  %v1905_v21 = vld [vmem:[%s3445_s3 + $0x100] sm:$0xf]  ;;  %v2473_v50 = vpack.i.bf16 %v532_v18, %v516_v20  ;;  %v2262_v18 = vor.u32 %v2427_v7, %v2259_v8  ;;  %v2010_v20 = vor.u32 %v2368_v14, %v2009_v13  ;;  %v2328_v7 = vld [vmem:[%s3445_s3 + $0xa4] sm:$0xf0]  ;;  %v2067_v13 = vld [vmem:[%s3445_s3 + $0x260] sm:$0xf0] }
 0x157   : > { %v1906_v22 = vor.u32 %v2343_v34, %v1905_v21  ;;  %v2161_v23 = vld [vmem:[%s3445_s3 + $0x300] sm:$0xf]  ;;  %v2475_v11 = vpack.i.bf16 %v533_v61, %v517_v60  ;;  %v2419_v21 = vld [vmem:[%s3445_s3 + $0x384] sm:$0xf]  ;;  %v2170_v61 = vor.u32 %v2408_v55, %v2169_v35  ;;  %v2105_v8 = vld [vmem:[%s3445_s3 + $0x288] sm:$0xf] }
 0x158   : > { %2464 = vxpose.xlu0.b32.cont [8/16] (narrow) %v2463_v26, 8  ;;  %v2162_v26 = vor.u32 %v2407_v24, %v2161_v23  ;;  %v2227_v34 = vld [vmem:[%s3445_s3 + $0x3a0] sm:$0xf0]  ;;  %v2266_v24 = vor.u32 %v2432_v16, %v2265_v36  ;;  %v2320_v36 = vld [vmem:[%s3445_s3 + $0x64] sm:$0xf0] }
 0x159   : > { %1373 = vmatpush.bf16.msra.mxu1 %v1906_v22  ;;  %1400 = vmatpush.bf16.msrb.mxu3 %v1878_v47  ;;  %v518_v22 = vmax.f32 %v460_v9, 0.0  ;;  %v2230_v29 = vor.u32 %v2419_v21, %v2227_v34  ;;  %v2352_v47 = vld [vmem:[%s3445_s3 + $0x164] sm:$0xf0]  ;;  %v2371_v21 = vld [vmem:[%s3445_s3 + $0x204] sm:$0xf] }
 0x15a   : > { %1386 = vmatpush.bf16.msrb.mxu2 %v2162_v26  ;;  %v499_v56 = vpop.f32.mrf.mxu3  ;;  %v2360_v26 = vld [vmem:[%s3445_s3 + $0x1a4] sm:$0xf0]  ;;  %v2035_v34 = vld [vmem:[%s3445_s3 + $0x220] sm:$0xf0]  ;;  %v2348_v55 = vld [vmem:[%s3445_s3 + $0x14c] sm:$0xf] }
 0x15b   : > { %v500_v10 = vadd.f32 %v2601_v38, %v499_v56  ;;  %v2166_v56 = vor.u32 %v2403_v49, %v2163_v32  ;;  %v2392_v9 = vld [vmem:[%s3445_s3 + $0x2a4] sm:$0xf0]  ;;  %v1979_v49 = vld [vmem:[%s3445_s3 + $0x1a8] sm:$0xf0] }
 0x15c   : > { %v2106_v14 = vor.u32 %v2392_v9, %v2105_v8  ;;  %v2073_v16 = vld [vmem:[%s3445_s3 + $0x248] sm:$0xf]  ;;  %v2420_v32 = vld [vmem:[%s3445_s3 + $0x38c] sm:$0xf] }
 0x15d   : > { %1374 = vmatpush.bf16.msra.mxu1 %v1874_v40  ;;  %1401 = vmatpush.bf16.msrb.mxu3 %v1846_v57  ;;  %v534_v23 = vmax.f32 %v500_v10, 0.0  ;;  %v1978_v40 = vor.u32 %v2360_v26, %v1977_v25  ;;  %v2041_v25 = vld [vmem:[%s3445_s3 + $0x208] sm:$0xf]  ;;  %v2332_v8 = vld [vmem:[%s3445_s3 + $0xcc] sm:$0xf] }
 0x15e   : > { %v2376_v26 = vld [vmem:[%s3445_s3 + $0x224] sm:$0xf0]  ;;  %v1883_v9 = vld [vmem:[%s3445_s3 + $0xe8] sm:$0xf0] }
 0x15f   : > { %v2477_v30 = vpack.i.bf16 %v534_v23, %v518_v22  ;;  %v1785_v22 = vld [vmem:[%s3445_s3 + $0x8] sm:$0xf]  ;;  %v2038_v23 = vor.u32 %v2371_v21, %v2035_v34  ;;  %v2329_v21 = vld [vmem:[%s3445_s3 + $0xac] sm:$0xf0] }
 0x160   : > { %2466 = vxpose.xlu0.b32.cont [9/16] (narrow) %v2465_v41, 8  ;;  %v2129_v41 = vld [vmem:[%s3445_s3 + $0x2c0] sm:$0xf] }
 0x161   : > { %v2130_v44 = vor.u32 %v2399_v42, %v2129_v41  ;;  %1402 = vmatpush.bf16.msrb.mxu3 %v1814_v5  ;;  %v2411_v41 = vld [vmem:[%s3445_s3 + $0x344] sm:$0xf] }
 0x162   : > { %v501_v27 = vpop.f32.mrf.mxu3  ;;  %v2195_v42 = vld [vmem:[%s3445_s3 + $0x360] sm:$0xf0] }
 0x163   : > { %1387 = vmatpush.bf16.msrb.mxu2 %v2130_v44  ;;  %v502_v44 = vadd.f32 %v2601_v38, %v501_v27  ;;  %v2198_v38 = vor.u32 %v2411_v41, %v2195_v42  ;;  %v2267_v42 = vld [vmem:[%s3445_s3 + $0x3e8] sm:$0xf0] }
 0x165   : > { %1403 = vmatpush.bf16.msrb.mxu3 %v1782_v19  ;;  %v535_v51 = vmax.f32 %v502_v44, 0.0  ;;  %v2369_v44 = vld [vmem:[%s3445_s3 + $0x1ec] sm:$0xf0] }
 0x167   : > { %1388 = vmatpush.bf16.msrb.mxu2 %v2098_v54  ;;  %v2344_v54 = vld [vmem:[%s3445_s3 + $0x124] sm:$0xf0] }
 0x168   : > { %2468 = vxpose.xlu0.b32.cont [10/16] (narrow) %v2467_v45, 8  ;;  %v1841_v45 = vld [vmem:[%s3445_s3 + $0x80] sm:$0xf] }
 0x169   : > { %v1842_v53 = vor.u32 %v2327_v46, %v1841_v45  ;;  %1435 = vmatpush.bf16.msra.mxu3 %v2266_v24  ;;  %v2234_v45 = vor.u32 %v2424_v39, %v2233_v28  ;;  %v1945_v46 = vld [vmem:[%s3445_s3 + $0x148] sm:$0xf]  ;;  %v2042_v28 = vor.u32 %v2376_v26, %v2041_v25  ;;  %v2364_v39 = vld [vmem:[%s3445_s3 + $0x1cc] sm:$0xf] }
 0x16a   : > { %v1946_v48 = vor.u32 %v2352_v47, %v1945_v46  ;;  %v2312_v24 = vld [vmem:[%s3445_s3 + $0x24] sm:$0xf0]  ;;  %v1819_v25 = vld [vmem:[%s3445_s3 + $0x68] sm:$0xf0] }
 0x16b   : > { %1375 = vmatpush.bf16.msra.mxu1 %v1842_v53  ;;  %v1913_v53 = vld [vmem:[%s3445_s3 + $0x108] sm:$0xf]  ;;  %v1786_v27 = vor.u32 %v2312_v24, %v1785_v22  ;;  %v2316_v24 = vld [vmem:[%s3445_s3 + $0x4c] sm:$0xf] }
 0x16c   : > { %v1914_v57 = vor.u32 %v2344_v54, %v1913_v53  ;;  %v2380_v26 = vld [vmem:[%s3445_s3 + $0x24c] sm:$0xf] }
 0x16d   : > { %1436 = vmatpush.bf16.msra.mxu3 %v2234_v45 }
 0x16f   : > { %1376 = vmatpush.bf16.msra.mxu1 %v1810_v0  ;;  %v2137_v0 = vld [vmem:[%s3445_s3 + $0x2c8] sm:$0xf] }
 0x170   : > { %2470 = vxpose.xlu0.b32.cont [11/16] (narrow) %v2469_v59, 8  ;;  %v2383_v59 = vld [vmem:[%s3445_s3 + $0x25c] sm:$0xf0]  ;;  %v2138_v5 = vor.u32 %v2400_v33, %v2137_v0  ;;  %v2340_v0 = vld [vmem:[%s3445_s3 + $0x10c] sm:$0xf] }
 0x171   : > { %v2066_v1 = vor.u32 %v2383_v59, %v2065_v58  ;;  %v2395_v58 = vld [vmem:[%s3445_s3 + $0x2c4] sm:$0xf]  ;;  %1437 = vmatpush.bf16.msra.mxu3 %v2202_v52  ;;  %v2361_v52 = vld [vmem:[%s3445_s3 + $0x1ac] sm:$0xf0]  ;;  %v1915_v33 = vld [vmem:[%s3445_s3 + $0x128] sm:$0xf0] }
 0x172   : > { %v2131_v59 = vld [vmem:[%s3445_s3 + $0x2e0] sm:$0xf0] }
 0x173   : > { %1389 = vmatpush.bf16.msrb.mxu2 %v2066_v1  ;;  %1377 = vmatpush.bf16.msra.mxu1 %v1778_v15  ;;  %v2134_v1 = vor.u32 %v2395_v58, %v2131_v59  ;;  %v1817_v15 = vld [vmem:[%s3445_s3 + $0x48] sm:$0xf]  ;;  %v2203_v58 = vld [vmem:[%s3445_s3 + $0x368] sm:$0xf0]  ;;  %v1953_v59 = vld [vmem:[%s3445_s3 + $0x150] sm:$0xf] }
 0x174   : > { %v1818_v19 = vor.u32 %v2320_v36, %v1817_v15 }
 0x175   : > { %1438 = vmatpush.bf16.msra.mxu3 %v2170_v61 }
 0x177   : > { %1409 = vmatpush.bf16.msrb.mxu1 %v2262_v18  ;;  %v2070_v18 = vor.u32 %v2379_v12, %v2067_v13  ;;  %v1889_v12 = vld [vmem:[%s3445_s3 + $0xd0] sm:$0xf] }
 0x178   : > { %2472 = vxpose.xlu0.b32.cont [12/16] (narrow) %v2471_v17, 8  ;;  %v2034_v17 = vor.u32 %v2375_v4, %v2033_v3  ;;  %v2387_v3 = vld [vmem:[%s3445_s3 + $0x284] sm:$0xf]  ;;  %v2337_v13 = vld [vmem:[%s3445_s3 + $0xec] sm:$0xf0] }
 0x179   : > { %v2099_v4 = vld [vmem:[%s3445_s3 + $0x2a0] sm:$0xf0]  ;;  %1439 = vmatpush.bf16.msra.mxu3 %v2138_v5  ;;  %v1918_v5 = vor.u32 %v2340_v0, %v1915_v33  ;;  %v1890_v36 = vor.u32 %v2337_v13, %v1889_v12  ;;  %v2209_v0 = vld [vmem:[%s3445_s3 + $0x350] sm:$0xf]  ;;  %v1923_v12 = vld [vmem:[%s3445_s3 + $0x130] sm:$0xf0] }
 0x17a   : > { %1390 = vmatpush.bf16.msrb.mxu2 %v2034_v17  ;;  %v2102_v10 = vor.u32 %v2387_v3, %v2099_v4  ;;  %v2384_v17 = vld [vmem:[%s3445_s3 + $0x264] sm:$0xf0]  ;;  %v1921_v3 = vld [vmem:[%s3445_s3 + $0x110] sm:$0xf]  ;;  %v2405_v13 = vld [vmem:[%s3445_s3 + $0x314] sm:$0xf] }
 0x17b   : > { %1410 = vmatpush.bf16.msrb.mxu1 %v2230_v29  ;;  %v2011_v29 = vld [vmem:[%s3445_s3 + $0x1e8] sm:$0xf0]  ;;  %v2345_v4 = vld [vmem:[%s3445_s3 + $0x12c] sm:$0xf0] }
 0x17c   : > { %v2014_v46 = vor.u32 %v2364_v39, %v2011_v29  ;;  %v2321_v39 = vld [vmem:[%s3445_s3 + $0x6c] sm:$0xf0]  ;;  %v1822_v29 = vor.u32 %v2316_v24, %v1819_v25 }
 0x17d   : > { %1440 = vmatpush.bf16.msra.mxu3 %v2106_v14  ;;  %v1886_v14 = vor.u32 %v2332_v8, %v1883_v9  ;;  %v2177_v8 = vld [vmem:[%s3445_s3 + $0x310] sm:$0xf] }
 0x17e   : > { %1422 = vmatpush.bf16.msra.mxu2 %v2010_v20  ;;  %v2074_v20 = vor.u32 %v2384_v17, %v2073_v16  ;;  %v2324_v16 = vld [vmem:[%s3445_s3 + $0x8c] sm:$0xf]  ;;  %v2113_v24 = vld [vmem:[%s3445_s3 + $0x290] sm:$0xf] }
 0x17f   : > { %1411 = vmatpush.bf16.msrb.mxu1 %v2198_v38  ;;  %v1851_v17 = vld [vmem:[%s3445_s3 + $0xa8] sm:$0xf0] }
 0x180   : > { %2474 = vxpose.xlu0.b32.cont [13/16] (narrow) %v2473_v50, 8  ;;  %v519_v50 = vmax.f32 %v462_v43, 0.0  ;;  %v2017_v43 = vld [vmem:[%s3445_s3 + $0x1d0] sm:$0xf]  ;;  %v1854_v34 = vor.u32 %v2324_v16, %v1851_v17 }
 0x181   : > { %1441 = vmatpush.bf16.msra.mxu3 %v2074_v20  ;;  %v2018_v38 = vor.u32 %v2369_v44, %v2017_v43  ;;  %v1857_v20 = vld [vmem:[%s3445_s3 + $0x90] sm:$0xf]  ;;  %v1787_v43 = vld [vmem:[%s3445_s3 + $0x28] sm:$0xf0] }
 0x182   : > { %1423 = vmatpush.bf16.msra.mxu2 %v1978_v40  ;;  %v2479_v60 = vpack.i.bf16 %v535_v51, %v519_v50  ;;  %v2428_v40 = vld [vmem:[%s3445_s3 + $0x3cc] sm:$0xf]  ;;  %v1985_v51 = vld [vmem:[%s3445_s3 + $0x190] sm:$0xf] }
 0x183   : > { %1412 = vmatpush.bf16.msrb.mxu1 %v2166_v56  ;;  %v2270_v37 = vor.u32 %v2428_v40, %v2267_v42  ;;  %v2235_v50 = vld [vmem:[%s3445_s3 + $0x3a8] sm:$0xf0]  ;;  %v1986_v35 = vor.u32 %v2361_v52, %v1985_v51  ;;  %v2275_v51 = vld [vmem:[%s3445_s3 + $0x3f0] sm:$0xf0]  ;;  %v2145_v16 = vld [vmem:[%s3445_s3 + $0x2d0] sm:$0xf] }
 0x184   : > { %v2238_v54 = vor.u32 %v2420_v32, %v2235_v50  ;;  %v1947_v56 = vld [vmem:[%s3445_s3 + $0x168] sm:$0xf0]  ;;  %v2429_v50 = vld [vmem:[%s3445_s3 + $0x3d4] sm:$0xf] }
 0x185   : > { %1442 = vmatpush.bf16.msra.mxu3 %v2042_v28  ;;  %v1950_v61 = vor.u32 %v2348_v55, %v1947_v56  ;;  %v1825_v28 = vld [vmem:[%s3445_s3 + $0x50] sm:$0xf]  ;;  %v2308_v40 = vld [vmem:[%s3445_s3 + $0xc] sm:$0xf]  ;;  %v2278_v56 = vor.u32 %v2429_v50, %v2275_v51  ;;  %v2309_v50 = vld [vmem:[%s3445_s3 + $0x14] sm:$0xf] }
 0x186   : > { %1424 = vmatpush.bf16.msra.mxu2 %v1946_v48  ;;  %v2356_v48 = vld [vmem:[%s3445_s3 + $0x18c] sm:$0xf]  ;;  %v1826_v42 = vor.u32 %v2321_v39, %v1825_v28  ;;  %v1790_v32 = vor.u32 %v2308_v40, %v1787_v43  ;;  %v2241_v55 = vld [vmem:[%s3445_s3 + $0x390] sm:$0xf]  ;;  %v1859_v28 = vld [vmem:[%s3445_s3 + $0xb0] sm:$0xf0] }
 0x187   : > { %1413 = vmatpush.bf16.msrb.mxu1 %v2134_v1  ;;  %v1982_v53 = vor.u32 %v2356_v48, %v1979_v49  ;;  %v2404_v1 = vld [vmem:[%s3445_s3 + $0x30c] sm:$0xf]  ;;  %v2365_v48 = vld [vmem:[%s3445_s3 + $0x1d4] sm:$0xf] }
 0x188   : > { %2476 = vxpose.xlu0.b32.cont [14/16] (narrow) %v2475_v11, 8  ;;  %v1850_v11 = vor.u32 %v2328_v7, %v1849_v6  ;;  %v1922_v7 = vor.u32 %v2345_v4, %v1921_v3  ;;  %v2372_v44 = vld [vmem:[%s3445_s3 + $0x20c] sm:$0xf]  ;;  %v2019_v49 = vld [vmem:[%s3445_s3 + $0x1f0] sm:$0xf0] }
 0x189   : > { %v1955_v3 = vld [vmem:[%s3445_s3 + $0x170] sm:$0xf0] }
 0x18a   : > { %1425 = vmatpush.bf16.msra.mxu2 %v1914_v57  ;;  %v2412_v57 = vld [vmem:[%s3445_s3 + $0x34c] sm:$0xf]  ;;  %v2413_v4 = vld [vmem:[%s3445_s3 + $0x354] sm:$0xf] }
 0x18b   : > { %1414 = vmatpush.bf16.msrb.mxu1 %v2102_v10  ;;  %v2206_v62 = vor.u32 %v2412_v57, %v2203_v58  ;;  %v2396_v10 = vld [vmem:[%s3445_s3 + $0x2cc] sm:$0xf]  ;;  %v2425_v57 = vld [vmem:[%s3445_s3 + $0x3ac] sm:$0xf0]  ;;  %v2357_v58 = vld [vmem:[%s3445_s3 + $0x194] sm:$0xf] }
 0x18c   : > { %v2389_v39 = vld [vmem:[%s3445_s3 + $0x294] sm:$0xf] }
 0x18e   : > { %1426 = vmatpush.bf16.msra.mxu2 %v1882_v2  ;;  %v2171_v2 = vld [vmem:[%s3445_s3 + $0x328] sm:$0xf0] }
 0x18f   : > { %1415 = vmatpush.bf16.msrb.mxu1 %v2070_v18  ;;  %v2174_v6 = vor.u32 %v2404_v1, %v2171_v2  ;;  %v2388_v18 = vld [vmem:[%s3445_s3 + $0x28c] sm:$0xf]  ;;  %v2417_v1 = vld [vmem:[%s3445_s3 + $0x36c] sm:$0xf0]  ;;  %v2349_v2 = vld [vmem:[%s3445_s3 + $0x154] sm:$0xf] }
 0x190   : > { %2478 = vxpose.xlu0.b32.cont [15/16] (narrow) %v2477_v30, 8 }
 0x192   : > { %1427 = vmatpush.bf16.msra.mxu2 %v1850_v11  ;;  %v2139_v11 = vld [vmem:[%s3445_s3 + $0x2e8] sm:$0xf0] }
 0x193   : > { %1416 = vmatpush.bf16.msrb.mxu1 %v2038_v23  ;;  %v2142_v15 = vor.u32 %v2396_v10, %v2139_v11  ;;  %v1858_v23 = vor.u32 %v2329_v21, %v1857_v20  ;;  %v2409_v10 = vld [vmem:[%s3445_s3 + $0x32c] sm:$0xf0]  ;;  %v2341_v11 = vld [vmem:[%s3445_s3 + $0x114] sm:$0xf] }
 0x194   : > { %v1891_v20 = vld [vmem:[%s3445_s3 + $0xf0] sm:$0xf0] }
 0x195   : > { %v2397_v21 = vld [vmem:[%s3445_s3 + $0x2d4] sm:$0xf] }
 0x196   : > { %1428 = vmatpush.bf16.msra.mxu2 %v1818_v19  ;;  %v2107_v19 = vld [vmem:[%s3445_s3 + $0x2a8] sm:$0xf0] }
 0x197   : > { %v2110_v22 = vor.u32 %v2388_v18, %v2107_v19  ;;  %v2401_v18 = vld [vmem:[%s3445_s3 + $0x2ec] sm:$0xf0]  ;;  %v2333_v19 = vld [vmem:[%s3445_s3 + $0xd4] sm:$0xf] }
 0x198   : > { %2480 = vxpose.xlu0.b32.end [16/16] (narrow) %v2479_v60, 8  ;;  %v2353_v60 = vld [vmem:[%s3445_s3 + $0x16c] sm:$0xf0] }
 0x199   : > { %v1954_v63 = vor.u32 %v2353_v60, %v1953_v59  ;;  %v1987_v59 = vld [vmem:[%s3445_s3 + $0x1b0] sm:$0xf0] }
 0x19a   : > { %1429 = vmatpush.bf16.msra.mxu2 %v1786_v27  ;;  %v2075_v27 = vld [vmem:[%s3445_s3 + $0x268] sm:$0xf0]  ;;  %v2421_v60 = vld [vmem:[%s3445_s3 + $0x394] sm:$0xf] }
 0x1c4   : > { %v2481_v41 = vpop.trf.xlu0 }
 0x1c5   : > { %v2485_v30 = vunpack.i.h.bf16 %v2481_v41  ;;  %v2482_v45 = vunpack.i.l.bf16 %v2481_v41  ;;  %v2078_v41 = vor.u32 %v2380_v26, %v2075_v27  ;;  %v2393_v26 = vld [vmem:[%s3445_s3 + $0x2ac] sm:$0xf0]  ;;  %v2325_v27 = vld [vmem:[%s3445_s3 + $0x94] sm:$0xf] }
 0x1c6   : > { %v2114_v40 = vor.u32 %v2393_v26, %v2113_v24  ;;  %v1897_v26 = vld [vmem:[%s3445_s3 + $0xd8] sm:$0xf] }
 0x1c7   : > { %v2949_v47 = vpack.c.bf16 %v2485_v30, %v2485_v30  ;;  %v2951_v31 = vpack.c.bf16 %v2482_v45, %v2482_v45  ;;  %v2043_v30 = vld [vmem:[%s3445_s3 + $0x228] sm:$0xf0]  ;;  %v1793_v45 = vld [vmem:[%s3445_s3 + $0x10] sm:$0xf] }
 0x1c8   : > { %v2046_v52 = vor.u32 %v2372_v44, %v2043_v30  ;;  %v2385_v44 = vld [vmem:[%s3445_s3 + $0x26c] sm:$0xf0]  ;;  %v2317_v30 = vld [vmem:[%s3445_s3 + $0x54] sm:$0xf] }
 0x1c9   : > { %1378 = vmatmul.bf16.vlgmr.msra.gmra.mxu1 %v2951_v31  ;;  %1391 = vmatmul.bf16.vlgmr.msrb.gmra.mxu2 %v2949_v47 }
 0x1ca   : > { %1404 = vmatmul.bf16.vlgmr.msrb.gmra.mxu3 %v2951_v31  ;;  %1448 = vmatpush.bf16.msra.mxu1 %v2014_v46  ;;  %v2313_v46 = vld [vmem:[%s3445_s3 + $0x2c] sm:$0xf0] }
 0x1cb   : > { %1461 = vmatpush.bf16.msrb.mxu2 %v2270_v37  ;;  %1474 = vmatpush.bf16.msrb.mxu3 %v2018_v38  ;;  %v2273_v37 = vld [vmem:[%s3445_s3 + $0x3d0] sm:$0xf] }
 0x1cc   : > { %v2433_v38 = vld [vmem:[%s3445_s3 + $0x3ec] sm:$0xf0] }
 0x1ce   : > { %1449 = vmatpush.bf16.msra.mxu1 %v1982_v53  ;;  %v1794_v53 = vor.u32 %v2313_v46, %v1793_v45  ;;  %v1827_v45 = vld [vmem:[%s3445_s3 + $0x70] sm:$0xf0] }
 0x1cf   : > { %1462 = vmatpush.bf16.msrb.mxu2 %v2238_v54  ;;  %1475 = vmatpush.bf16.msrb.mxu3 %v1986_v35  ;;  %v2274_v54 = vor.u32 %v2433_v38, %v2273_v37  ;;  %v2022_v35 = vor.u32 %v2365_v48, %v2019_v49  ;;  %v2381_v46 = vld [vmem:[%s3445_s3 + $0x254] sm:$0xf]  ;;  %v1830_v48 = vor.u32 %v2317_v30, %v1827_v45  ;;  %v2049_v49 = vld [vmem:[%s3445_s3 + $0x210] sm:$0xf]  ;;  %v2330_v30 = vld [vmem:[%s3445_s3 + $0xb4] sm:$0xf0] }
 0x1d0   : > { %v2083_v37 = vld [vmem:[%s3445_s3 + $0x270] sm:$0xf0]  ;;  %v2121_v45 = vld [vmem:[%s3445_s3 + $0x298] sm:$0xf] }
 0x1d1   : > { %v2086_v51 = vor.u32 %v2381_v46, %v2083_v37  ;;  %v2394_v46 = vld [vmem:[%s3445_s3 + $0x2b4] sm:$0xf0]  ;;  %v2326_v37 = vld [vmem:[%s3445_s3 + $0x9c] sm:$0xf] }
 0x1d2   : > { %1450 = vmatpush.bf16.msra.mxu1 %v1950_v61  ;;  %v2243_v61 = vld [vmem:[%s3445_s3 + $0x3b0] sm:$0xf0] }
 0x1d3   : > { %1463 = vmatpush.bf16.msrb.mxu2 %v2206_v62  ;;  %1476 = vmatpush.bf16.msrb.mxu3 %v1954_v63  ;;  %v2242_v62 = vor.u32 %v2425_v57, %v2241_v55  ;;  %v1990_v63 = vor.u32 %v2357_v58, %v1987_v59  ;;  %v2246_v33 = vor.u32 %v2421_v60, %v2243_v61  ;;  %v2370_v55 = vld [vmem:[%s3445_s3 + $0x1f4] sm:$0xf0]  ;;  %v2366_v58 = vld [vmem:[%s3445_s3 + $0x1dc] sm:$0xf] }
 0x1d4   : > { %v2434_v57 = vld [vmem:[%s3445_s3 + $0x3f4] sm:$0xf0]  ;;  %v2027_v59 = vld [vmem:[%s3445_s3 + $0x1f8] sm:$0xf0] }
 0x1d6   : > { %1451 = vmatpush.bf16.msra.mxu1 %v1918_v5  ;;  %v2211_v5 = vld [vmem:[%s3445_s3 + $0x370] sm:$0xf0] }
 0x1d7   : > { %1464 = vmatpush.bf16.msrb.mxu2 %v2174_v6  ;;  %1477 = vmatpush.bf16.msrb.mxu3 %v1922_v7  ;;  %v2210_v6 = vor.u32 %v2417_v1, %v2209_v0  ;;  %v1958_v7 = vor.u32 %v2349_v2, %v1955_v3  ;;  %v2214_v9 = vor.u32 %v2413_v4, %v2211_v5  ;;  %v1993_v1 = vld [vmem:[%s3445_s3 + $0x198] sm:$0xf]  ;;  %v2358_v5 = vld [vmem:[%s3445_s3 + $0x19c] sm:$0xf] }
 0x1d8   : > { %v2362_v2 = vld [vmem:[%s3445_s3 + $0x1b4] sm:$0xf0] }
 0x1d9   : > { %1417 = vmatmul.bf16.vlgmr.msrb.gmra.mxu1 %v2949_v47  ;;  %1430 = vmatmul.bf16.vlgmr.msra.gmra.mxu2 %v2951_v31  ;;  %v2249_v3 = vld [vmem:[%s3445_s3 + $0x398] sm:$0xf] }
 0x1da   : > { %1443 = vmatmul.bf16.vlgmr.msra.gmra.mxu3 %v2949_v47  ;;  %1452 = vmatpush.bf16.msra.mxu1 %v1886_v14  ;;  %v2179_v14 = vld [vmem:[%s3445_s3 + $0x330] sm:$0xf0]  ;;  %v2426_v4 = vld [vmem:[%s3445_s3 + $0x3b4] sm:$0xf0] }
 0x1db   : > { %1465 = vmatpush.bf16.msrb.mxu2 %v2142_v15  ;;  %1478 = vmatpush.bf16.msrb.mxu3 %v1890_v36  ;;  %v2178_v15 = vor.u32 %v2409_v10, %v2177_v8  ;;  %v1926_v36 = vor.u32 %v2341_v11, %v1923_v12  ;;  %v2182_v17 = vor.u32 %v2405_v13, %v2179_v14  ;;  %v1961_v10 = vld [vmem:[%s3445_s3 + $0x158] sm:$0xf]  ;;  %v2350_v14 = vld [vmem:[%s3445_s3 + $0x15c] sm:$0xf] }
 0x1dc   : > { %v2250_v8 = vor.u32 %v2426_v4, %v2249_v3  ;;  %v2354_v11 = vld [vmem:[%s3445_s3 + $0x174] sm:$0xf0] }
 0x1dd   : > { %v2217_v12 = vld [vmem:[%s3445_s3 + $0x358] sm:$0xf] }
 0x1de   : > { %1453 = vmatpush.bf16.msra.mxu1 %v1854_v34  ;;  %v2147_v34 = vld [vmem:[%s3445_s3 + $0x2f0] sm:$0xf0]  ;;  %v2418_v13 = vld [vmem:[%s3445_s3 + $0x374] sm:$0xf0] }
 0x1df   : > { %1466 = vmatpush.bf16.msrb.mxu2 %v2110_v22  ;;  %1479 = vmatpush.bf16.msrb.mxu3 %v1858_v23  ;;  %v2146_v22 = vor.u32 %v2401_v18, %v2145_v16  ;;  %v1894_v23 = vor.u32 %v2333_v19, %v1891_v20  ;;  %v2150_v25 = vor.u32 %v2397_v21, %v2147_v34  ;;  %v1929_v18 = vld [vmem:[%s3445_s3 + $0x118] sm:$0xf]  ;;  %v2342_v34 = vld [vmem:[%s3445_s3 + $0x11c] sm:$0xf] }
 0x1e0   : > { %v2218_v16 = vor.u32 %v2418_v13, %v2217_v12  ;;  %v2346_v19 = vld [vmem:[%s3445_s3 + $0x134] sm:$0xf0]  ;;  %v2187_v12 = vld [vmem:[%s3445_s3 + $0x338] sm:$0xf0] }
 0x1e1   : > { %v2185_v20 = vld [vmem:[%s3445_s3 + $0x318] sm:$0xf] }
 0x1e2   : > { %1454 = vmatpush.bf16.msra.mxu1 %v1822_v29  ;;  %v2115_v29 = vld [vmem:[%s3445_s3 + $0x2b0] sm:$0xf0]  ;;  %v2410_v21 = vld [vmem:[%s3445_s3 + $0x334] sm:$0xf0] }
 0x1e3   : > { %1467 = vmatpush.bf16.msrb.mxu2 %v2078_v41  ;;  %1480 = vmatpush.bf16.msrb.mxu3 %v1826_v42  ;;  %v1862_v41 = vor.u32 %v2325_v27, %v1859_v28  ;;  %v2081_v42 = vld [vmem:[%s3445_s3 + $0x250] sm:$0xf]  ;;  %v2118_v43 = vor.u32 %v2389_v39, %v2115_v29  ;;  %v2186_v24 = vor.u32 %v2410_v21, %v2185_v20  ;;  %v2338_v27 = vld [vmem:[%s3445_s3 + $0xf4] sm:$0xf0]  ;;  %v2334_v29 = vld [vmem:[%s3445_s3 + $0xdc] sm:$0xf] }
 0x1e4   : > { %v2082_v38 = vor.u32 %v2385_v44, %v2081_v42  ;;  %v2153_v28 = vld [vmem:[%s3445_s3 + $0x2d8] sm:$0xf]  ;;  %v2374_v21 = vld [vmem:[%s3445_s3 + $0x21c] sm:$0xf] }
 0x1e5   : > { %v2402_v39 = vld [vmem:[%s3445_s3 + $0x2f4] sm:$0xf0] }
 0x1e6   : > { %1455 = vmatpush.bf16.msra.mxu1 %v1790_v32  ;;  %v2377_v32 = vld [vmem:[%s3445_s3 + $0x22c] sm:$0xf0]  ;;  %v2154_v42 = vor.u32 %v2402_v39, %v2153_v28  ;;  %v1865_v44 = vld [vmem:[%s3445_s3 + $0x98] sm:$0xf] }
 0x1e7   : > { %1468 = vmatpush.bf16.msrb.mxu2 %v2046_v52  ;;  %1481 = vmatpush.bf16.msrb.mxu3 %v1794_v53  ;;  %v1795_v52 = vld [vmem:[%s3445_s3 + $0x30] sm:$0xf0]  ;;  %v2050_v60 = vor.u32 %v2377_v32, %v2049_v49  ;;  %v2122_v49 = vor.u32 %v2394_v46, %v2121_v45 }
 0x1e8   : > { %v2373_v53 = vld [vmem:[%s3445_s3 + $0x214] sm:$0xf]  ;;  %v1798_v61 = vor.u32 %v2309_v50, %v1795_v52  ;;  %v1833_v50 = vld [vmem:[%s3445_s3 + $0x58] sm:$0xf] }
 0x1e9   : > { %1456 = vmatmul.bf16.vlgmr.msra.gmra.mxu1 %v2951_v31  ;;  %v2089_v52 = vld [vmem:[%s3445_s3 + $0x258] sm:$0xf] }
 0x1ea   : > { %1487 = vmatpush.bf16.msrb.mxu1 %v2274_v54  ;;  %1469 = vmatmul.bf16.vlgmr.msrb.gmra.mxu2 %v2949_v47  ;;  %v2051_v54 = vld [vmem:[%s3445_s3 + $0x230] sm:$0xf0] }
 0x1eb   : > { %1500 = vmatpush.bf16.msra.mxu2 %v2022_v35  ;;  %1513 = vmatpush.bf16.msra.mxu3 %v2278_v56  ;;  %v2025_v35 = vld [vmem:[%s3445_s3 + $0x1d8] sm:$0xf] }
 0x1ec   : > { %1482 = vmatmul.bf16.vlgmr.msrb.gmra.mxu3 %v2951_v31  ;;  %v2281_v56 = vld [vmem:[%s3445_s3 + $0x3d8] sm:$0xf] }
 0x1ed   : > { %v2282_v0 = vor.u32 %v2434_v57, %v2281_v56 }
 0x1ee   : > { %1488 = vmatpush.bf16.msrb.mxu1 %v2242_v62  ;;  %v2054_v62 = vor.u32 %v2373_v53, %v2051_v54  ;;  %v2386_v53 = vld [vmem:[%s3445_s3 + $0x274] sm:$0xf0]  ;;  %v2318_v54 = vld [vmem:[%s3445_s3 + $0x5c] sm:$0xf] }
 0x1ef   : > { %1501 = vmatpush.bf16.msra.mxu2 %v1990_v63  ;;  %1514 = vmatpush.bf16.msra.mxu3 %v2246_v33  ;;  %v2026_v63 = vor.u32 %v2370_v55, %v2025_v35  ;;  %v2030_v33 = vor.u32 %v2366_v58, %v2027_v59  ;;  %v1835_v35 = vld [vmem:[%s3445_s3 + $0x78] sm:$0xf0]  ;;  %v2090_v56 = vor.u32 %v2386_v53, %v2089_v52  ;;  %v1801_v58 = vld [vmem:[%s3445_s3 + $0x18] sm:$0xf] }
 0x1f0   : > { %v1838_v57 = vor.u32 %v2318_v54, %v1835_v35  ;;  %v2314_v59 = vld [vmem:[%s3445_s3 + $0x34] sm:$0xf0] }
 0x1f2   : > { %1489 = vmatpush.bf16.msrb.mxu1 %v2210_v6  ;;  %v1995_v6 = vld [vmem:[%s3445_s3 + $0x1b8] sm:$0xf0] }
 0x1f3   : > { %1502 = vmatpush.bf16.msra.mxu2 %v1958_v7  ;;  %1515 = vmatpush.bf16.msra.mxu3 %v2214_v9  ;;  %v1994_v7 = vor.u32 %v2362_v2, %v1993_v1  ;;  %v1998_v9 = vor.u32 %v2358_v5, %v1995_v6  ;;  %v1802_v1 = vor.u32 %v2314_v59, %v1801_v58  ;;  %v2422_v5 = vld [vmem:[%s3445_s3 + $0x39c] sm:$0xf] }
 0x1f4   : > { %v2251_v6 = vld [vmem:[%s3445_s3 + $0x3b8] sm:$0xf0] }
 0x1f6   : > { %1490 = vmatpush.bf16.msrb.mxu1 %v2178_v15  ;;  %v1963_v15 = vld [vmem:[%s3445_s3 + $0x178] sm:$0xf0] }
 0x1f7   : > { %1503 = vmatpush.bf16.msra.mxu2 %v1926_v36  ;;  %1516 = vmatpush.bf16.msra.mxu3 %v2182_v17  ;;  %v1962_v36 = vor.u32 %v2354_v11, %v1961_v10  ;;  %v1966_v17 = vor.u32 %v2350_v14, %v1963_v15  ;;  %v2406_v11 = vld [vmem:[%s3445_s3 + $0x31c] sm:$0xf] }
 0x1f8   : > { %v2190_v13 = vor.u32 %v2406_v11, %v2187_v12  ;;  %v2398_v14 = vld [vmem:[%s3445_s3 + $0x2dc] sm:$0xf] }
 0x1fa   : > { %1491 = vmatpush.bf16.msrb.mxu1 %v2146_v22  ;;  %v1931_v22 = vld [vmem:[%s3445_s3 + $0x138] sm:$0xf0] }
 0x1fb   : > { %1504 = vmatpush.bf16.msra.mxu2 %v1894_v23  ;;  %1517 = vmatpush.bf16.msra.mxu3 %v2150_v25  ;;  %v1930_v23 = vor.u32 %v2346_v19, %v1929_v18  ;;  %v1934_v25 = vor.u32 %v2342_v34, %v1931_v22  ;;  %v2382_v18 = vld [vmem:[%s3445_s3 + $0x25c] sm:$0xf] }
 0x1fc   : > { %v2091_v19 = vld [vmem:[%s3445_s3 + $0x278] sm:$0xf0] }
 0x1fd   : > { %v2094_v20 = vor.u32 %v2382_v18, %v2091_v19  ;;  %v2059_v34 = vld [vmem:[%s3445_s3 + $0x238] sm:$0xf0] }
 0x1fe   : > { %1492 = vmatpush.bf16.msrb.mxu1 %v2114_v40  ;;  %v1899_v40 = vld [vmem:[%s3445_s3 + $0xf8] sm:$0xf0]  ;;  %v2062_v22 = vor.u32 %v2374_v21, %v2059_v34 }
 0x1ff   : > { %1505 = vmatpush.bf16.msra.mxu2 %v1862_v41  ;;  %1518 = vmatpush.bf16.msra.mxu3 %v2118_v43  ;;  %v1898_v41 = vor.u32 %v2338_v27, %v1897_v26  ;;  %v1902_v43 = vor.u32 %v2334_v29, %v1899_v40 }
 0x202   : > { %1493 = vmatpush.bf16.msrb.mxu1 %v2082_v38  ;;  %v1867_v38 = vld [vmem:[%s3445_s3 + $0xb8] sm:$0xf0] }
 0x203   : > { %1506 = vmatpush.bf16.msra.mxu2 %v1830_v48  ;;  %1519 = vmatpush.bf16.msra.mxu3 %v2086_v51  ;;  %v1866_v48 = vor.u32 %v2330_v30, %v1865_v44  ;;  %v1870_v32 = vor.u32 %v2326_v37, %v1867_v38  ;;  %v2322_v51 = vld [vmem:[%s3445_s3 + $0x74] sm:$0xf0] }
 0x204   : > { %v1834_v55 = vor.u32 %v2322_v51, %v1833_v50 }
 0x206   : > { %1494 = vmatpush.bf16.msrb.mxu1 %v2050_v60  ;;  %v2057_v60 = vld [vmem:[%s3445_s3 + $0x218] sm:$0xf] }
 0x207   : > { %1507 = vmatpush.bf16.msra.mxu2 %v1798_v61  ;;  %1520 = vmatpush.bf16.msra.mxu3 %v2054_v62  ;;  %v2378_v61 = vld [vmem:[%s3445_s3 + $0x234] sm:$0xf0]  ;;  %v2310_v62 = vld [vmem:[%s3445_s3 + $0x1c] sm:$0xf] }
 0x208   : > { %v2058_v2 = vor.u32 %v2378_v61, %v2057_v60 }
 0x209   : > { %1495 = vmatmul.bf16.vlgmr.msrb.gmra.mxu1 %v2949_v47 }
 0x20a   : > { %1526 = vmatpush.bf16.msra.mxu1 %v2026_v63  ;;  %1508 = vmatmul.bf16.vlgmr.msra.gmra.mxu2 %v2951_v31  ;;  %v1803_v63 = vld [vmem:[%s3445_s3 + $0x38] sm:$0xf0] }
 0x20b   : > { %1539 = vmatpush.bf16.msrb.mxu2 %v2282_v0  ;;  %1552 = vmatpush.bf16.msrb.mxu3 %v2030_v33  ;;  %v2430_v0 = vld [vmem:[%s3445_s3 + $0x3dc] sm:$0xf]  ;;  %v1806_v3 = vor.u32 %v2310_v62, %v1803_v63 }
 0x20c   : > { %1521 = vmatmul.bf16.vlgmr.msra.gmra.mxu3 %v2949_v47  ;;  %v2283_v33 = vld [vmem:[%s3445_s3 + $0x3f8] sm:$0xf0] }
 0x20d   : > { %v2286_v4 = vor.u32 %v2430_v0, %v2283_v33 }
 0x20e   : > { %1527 = vmatpush.bf16.msra.mxu1 %v1994_v7  ;;  %v2254_v7 = vor.u32 %v2422_v5, %v2251_v6 }
 0x20f   : > { %1540 = vmatpush.bf16.msrb.mxu2 %v2250_v8  ;;  %1553 = vmatpush.bf16.msrb.mxu3 %v1998_v9  ;;  %v2414_v8 = vld [vmem:[%s3445_s3 + $0x35c] sm:$0xf] }
 0x210   : > { %v2219_v9 = vld [vmem:[%s3445_s3 + $0x378] sm:$0xf0] }
 0x211   : > { %v2222_v10 = vor.u32 %v2414_v8, %v2219_v9 }
 0x212   : > { %1528 = vmatpush.bf16.msra.mxu1 %v1962_v36  ;;  %v2390_v36 = vld [vmem:[%s3445_s3 + $0x29c] sm:$0xf] }
 0x213   : > { %1541 = vmatpush.bf16.msrb.mxu2 %v2218_v16  ;;  %1554 = vmatpush.bf16.msrb.mxu3 %v1966_v17  ;;  %v2123_v16 = vld [vmem:[%s3445_s3 + $0x2b8] sm:$0xf0] }
 0x214   : > { %v2126_v17 = vor.u32 %v2390_v36, %v2123_v16 }
 0x216   : > { %1529 = vmatpush.bf16.msra.mxu1 %v1930_v23 }
 0x217   : > { %1542 = vmatpush.bf16.msrb.mxu2 %v2186_v24  ;;  %1555 = vmatpush.bf16.msrb.mxu3 %v1934_v25 }
 0x21a   : > { %1530 = vmatpush.bf16.msra.mxu1 %v1898_v41 }
 0x21b   : > { %1543 = vmatpush.bf16.msrb.mxu2 %v2154_v42  ;;  %1556 = vmatpush.bf16.msrb.mxu3 %v1902_v43 }
 0x21e   : > { %1531 = vmatpush.bf16.msra.mxu1 %v1866_v48 }
 0x21f   : > { %1544 = vmatpush.bf16.msrb.mxu2 %v2122_v49  ;;  %1557 = vmatpush.bf16.msrb.mxu3 %v1870_v32 }
 0x222   : > { %1532 = vmatpush.bf16.msra.mxu1 %v1834_v55 }
 0x223   : > { %1545 = vmatpush.bf16.msrb.mxu2 %v2090_v56  ;;  %1558 = vmatpush.bf16.msrb.mxu3 %v1838_v57 }
 0x226   : > { %1533 = vmatpush.bf16.msra.mxu1 %v1802_v1 }
 0x227   : > { %1546 = vmatpush.bf16.msrb.mxu2 %v2058_v2  ;;  %1559 = vmatpush.bf16.msrb.mxu3 %v1806_v3 }
 0x229   : > { %1534 = vmatmul.bf16.vlgmr.msra.gmra.mxu1 %v2951_v31 }
 0x22a   : > { %1565 = vmatpush.bf16.msrb.mxu1 %v2286_v4  ;;  %1547 = vmatmul.bf16.vlgmr.msrb.gmra.mxu2 %v2949_v47  ;;  %v1578_v4 = vld [vmem:[%s3446_s4] sm:$0x1] }
 0x22b   : > { %1560 = vmatmul.bf16.vlgmr.msrb.gmra.mxu3 %v2951_v31  ;;  %v2155_v31 = vld [vmem:[%s3445_s3 + $0x2f8] sm:$0xf0] }
 0x22c   : > { %v2158_v15 = vor.u32 %v2398_v14, %v2155_v31 }
 0x22e   : > { %1566 = vmatpush.bf16.msrb.mxu1 %v2254_v7 }
 0x232   : > { %1567 = vmatpush.bf16.msrb.mxu1 %v2222_v10 }
 0x236   : > { %1568 = vmatpush.bf16.msrb.mxu1 %v2190_v13 }
 0x23a   : > { %1569 = vmatpush.bf16.msrb.mxu1 %v2158_v15 }
 0x23e   : > { %1570 = vmatpush.bf16.msrb.mxu1 %v2126_v17 }
 0x242   : > { %1571 = vmatpush.bf16.msrb.mxu1 %v2094_v20 }
 0x246   : > { %1572 = vmatpush.bf16.msrb.mxu1 %v2062_v22  ;;  %v1379_v23 = vpop.f32.mrf.mxu1 }
 0x249   : > { %1573 = vmatmul.bf16.vlgmr.msrb.gmra.mxu1 %v2949_v47 }
 0x24c   : > { %v1392_v24 = vpop.f32.mrf.mxu2 }
 0x24d   : > { %v1393_v25 = vadd.f32 %v1392_v24, %v1379_v23  ;;  %v1405_v26 = vpop.f32.mrf.mxu3 }
 0x24e   : > { %v1381_v27 = vpop.f32.mrf.mxu1 }
 0x24f   : > { %v1579_v5 = vadd.f32 %v1578_v4, %v1393_v25 }
 0x254   : > { %v1394_v28 = vpop.f32.mrf.mxu2 }
 0x255   : > { %v1407_v39 = vpop.f32.mrf.mxu3 }
 0x256   : > { %v1418_v29 = vpop.f32.mrf.mxu1 }
 0x257   : > { %v1419_v40 = vadd.f32 %v1418_v29, %v1405_v26 }
 0x259   : > { %1581 = vst [vmem:[#allocation1] sm:$0xff] %v1419_v40 }
 0x25c   : > { %v1431_v41 = vpop.f32.mrf.mxu2 }
 0x25d   : > { %v1444_v42 = vpop.f32.mrf.mxu3 }
 0x25e   : > { %v1420_v43 = vpop.f32.mrf.mxu1  ;;  %v1445_v44 = vadd.f32 %v1444_v42, %v1431_v41 }
 0x260   : > { %v1583_v30 = vld [vmem:[#allocation1 + $0x1] ss:$9 sm:$0xff] }
 0x261   : > { %1587 = vst [vmem:[#allocation1] sm:$0xff] %v1445_v44  ;;  %v1585_v6 = vadd.f32 %v1583_v30, %v1579_v5 }
 0x264   : > { %v1433_v45 = vpop.f32.mrf.mxu2 }
 0x265   : > { %v1446_v46 = vpop.f32.mrf.mxu3 }
 0x266   : > { %v1457_v37 = vpop.f32.mrf.mxu1 }
 0x268   : > { %v1589_v32 = vld [vmem:[#allocation1 + $0x2] ss:$9 sm:$0xff] }
 0x269   : > { %v1591_v8 = vadd.f32 %v1589_v32, %v1585_v6 }
 0x26d   : > { %v1470_v47 = vpop.f32.mrf.mxu2 }
 0x26e   : > { %v1471_v48 = vadd.f32 %v1470_v47, %v1457_v37  ;;  %v1459_v49 = vpop.f32.mrf.mxu1 }
 0x26f   : > { %v1483_v38 = vpop.f32.mrf.mxu3 }
 0x270   : > { %1593 = vst [vmem:[#allocation1] sm:$0xff] %v1471_v48 }
 0x275   : > { %v1472_v50 = vpop.f32.mrf.mxu2 }
 0x277   : > { %v1485_v51 = vpop.f32.mrf.mxu3  ;;  %v1595_v54 = vld [vmem:[#allocation1 + $0x3] ss:$9 sm:$0xff] }
 0x278   : > { %v1597_v11 = vadd.f32 %v1595_v54, %v1591_v8 }
 0x286   : > { %v1496_v52 = vpop.f32.mrf.mxu1 }
 0x287   : > { %v1497_v53 = vadd.f32 %v1496_v52, %v1483_v38 }
 0x289   : > { %1599 = vst [vmem:[#allocation1] sm:$0xff] %v1497_v53 }
 0x28d   : > { %v1509_v35 = vpop.f32.mrf.mxu2 }
 0x28e   : > { %v1498_v56 = vpop.f32.mrf.mxu1 }
 0x28f   : > { %v1522_v55 = vpop.f32.mrf.mxu3 }
 0x290   : > { %v1523_v57 = vadd.f32 %v1522_v55, %v1509_v35  ;;  %v1601_v58 = vld [vmem:[#allocation1 + $0x4] ss:$9 sm:$0xff] }
 0x291   : > { %v1603_v12 = vadd.f32 %v1601_v58, %v1597_v11 }
 0x292   : > { %1605 = vst [vmem:[#allocation1] sm:$0xff] %v1523_v57 }
 0x295   : > { %v1511_v59 = vpop.f32.mrf.mxu2 }
 0x297   : > { %v1524_v60 = vpop.f32.mrf.mxu3 }
 0x299   : > { %v1607_v1 = vld [vmem:[#allocation1 + $0x5] ss:$9 sm:$0xff] }
 0x29a   : > { %v1609_v13 = vadd.f32 %v1607_v1, %v1603_v12 }
 0x2a6   : > { %v1535_v61 = vpop.f32.mrf.mxu1 }
 0x2ad   : > { %v1548_v62 = vpop.f32.mrf.mxu2 }
 0x2ae   : > { %v1561_v63 = vpop.f32.mrf.mxu3  ;;  %v1549_v0 = vadd.f32 %v1548_v62, %v1535_v61  ;;  %v1537_v33 = vpop.f32.mrf.mxu1 }
 0x2b0   : > { %1611 = vst [vmem:[#allocation1] sm:$0xff] %v1549_v0 }
 0x2b5   : > { %v1550_v2 = vpop.f32.mrf.mxu2 }
 0x2b6   : > { %v1563_v3 = vpop.f32.mrf.mxu3 }
 0x2b7   : > { %v1613_v10 = vld [vmem:[#allocation1 + $0x6] ss:$9 sm:$0xff] }
 0x2b8   : > { %v1615_v31 = vadd.f32 %v1613_v10, %v1609_v13 }
 0x2c6   : > { %v1574_v7 = vpop.f32.mrf.mxu1 }
 0x2c7   : > { %v1575_v9 = vadd.f32 %v1574_v7, %v1561_v63 }
 0x2c9   : > { %1617 = vst [vmem:[#allocation1] sm:$0xff] %v1575_v9 }
 0x2ce   : > { %v1576_v14 = vpop.f32.mrf.mxu1 }
 0x2d0   : > { %v1619_v15 = vld [vmem:[#allocation1 + $0x7] ss:$9 sm:$0xff] }
 0x2d1   : > { %v1621_v36 = vadd.f32 %v1619_v15, %v1615_v31 }
 0x2d3   : > { %v1623_v16 = vperm.slane %v1621_v36, 0 }
 0x2d5   : > { %1625 = vst [vmem:[%s224_s21] sm:$0xff] %v1623_v16 }
 0x2d6 PF: > { %s15_s18 = sadd.s32 1, %s2493_s18  }
 0x2d7   : > { %p12_p5 = scmp.ge.s32.totalorder %s15_s18, 4  }
 0x2d9   :  { %14 = sbr.rel (!%p12_p5) target bundleno = 1 (0x1), region = 77 }

</bundles_post_ra>
